<compile_context>
chip_gen: v6e
topology: v6e:2x2x1
jax: 0.10.0
libtpu: 0.0.40
codegen_flags: <defaults>
</compile_context>

<pallas_src>
import jax
import jax.numpy as jnp
from jax import lax
from jax.experimental import pallas as pl
from jax.experimental.pallas import tpu as pltpu

MXU_DTYPE = jnp.bfloat16    # matmul input dtype (MXU accumulates in f32)
MASK_DTYPE = jnp.bfloat16   # cqf mask is 0/1 -> exact in bf16, half the HBM bytes
NC_PAD = 128                # lane-dense logits width (classes padded to 128 lanes)
ROW_BLOCK = 128             # upper bound on batch rows per grid step


def _hms_kernel(eeg_ref, mask_ref, w1_ref, b1_ref, w2_ref, b2_ref,
                w3_ref, b3_ref, o_ref):
    tb, C, T = eeg_ref.shape
    BT = tb * T

    # ---- preprocess (cfg.input_mask=True): fused eeg/cqf channel concat -----
    # Blocks arrive in the original NCT layout (time on lanes -> dense DMA).
    # Concat on the channel (sublane) axis, then one small in-VMEM transpose
    # builds the (batch*time, channels) matmul LHS.
    x_ct = jnp.concatenate(
        [eeg_ref[...], mask_ref[...].astype(jnp.float32)], axis=1)    # (tb, 2C, T)
    x = jnp.transpose(x_ct, (0, 2, 1)).reshape(BT, 2 * C)             # (BT, 2C) f32

    # Boundary masks for the +-1 taps: after folding batch into rows the roll
    # wraps across batch elements, so those taps are zeroed ('same' padding).
    # Built without a per-row integer modulo.
    t_idx = lax.broadcasted_iota(jnp.int32, (tb, T, 1), 1).reshape(BT, 1)
    has_prev = (t_idx > 0).astype(jnp.float32)        # row has a t-1 neighbor
    has_next = (t_idx < T - 1).astype(jnp.float32)    # row has a t+1 neighbor

    def conv_relu(h, w_ref, b_ref):
        # 'same' K=3 conv = three accumulating MXU dots (one per tap); no
        # (BT, 3*Cin) concat temporary. +-1 shifts via sublane rolls (XLU slot);
        # masking kept in f32 (v5e has no bf16 VALU), bf16 only at the MXU.
        n = h.shape[0]
        h_prev = pltpu.roll(h, shift=1, axis=0) * has_prev       # x[t-1]
        h_next = pltpu.roll(h, shift=n - 1, axis=0) * has_next   # x[t+1]
        acc = jnp.dot(h_prev.astype(MXU_DTYPE), w_ref[0],
                      preferred_element_type=jnp.float32)
        acc = acc + jnp.dot(h.astype(MXU_DTYPE), w_ref[1],
                            preferred_element_type=jnp.float32)
        acc = acc + jnp.dot(h_next.astype(MXU_DTYPE), w_ref[2],
                            preferred_element_type=jnp.float32)
        return jnp.maximum(acc + b_ref[...], 0.0)                # f32 bias + ReLU

    # ---- eeg_encoder: conv -> relu -> conv -> relu ---------------------------
    h = conv_relu(x, w1_ref, b1_ref)                             # (BT, H) f32
    h = conv_relu(h, w2_ref, b2_ref)                             # (BT, H) f32

    # ---- eeg_feature_processor: mean pool over time --------------------------
    # TODO(synk): for very long records add a time-tile grid axis ("arbitrary")
    # with a (tb, H) f32 partial-sum scratch and a K=3 halo carry; with the
    # VMEM-derived row block below a whole record fits in one block here.
    feat = jnp.mean(h.reshape(tb, T, -1), axis=1)                # (tb, H) f32

    # ---- head: linear, lane-dense (classes padded to 128 lanes) --------------
    logits = jnp.dot(feat.astype(MXU_DTYPE), w3_ref[...],
                     preferred_element_type=jnp.float32) + b3_ref[...]
    # post_adapter: identity in eval mode.
    o_ref[...] = logits[:, None, :].astype(o_ref.dtype)


def _vmem_capacity_bytes():
    """Per-TensorCore VMEM capacity (generation-aware); conservative fallback."""
    try:
        return int(pltpu.get_tpu_info().vmem_capacity_bytes)
    except Exception:
        return 64 << 20       # v7x per-TC capacity — the tightest generation


def _per_row_vmem_bytes(C, T, H):
    """Rough per-batch-row VMEM footprint of one grid step (inputs + temporaries)."""
    cin = 2 * C
    io = 2 * T * C * (4 + 2)                    # eeg f32 + mask bf16, double-buffered
    xcat = T * cin * (4 + 4 + 2)                # concat, transposed LHS, bf16 cast
    taps = 2 * T * max(cin, H) * (4 + 2)        # two shifted copies (f32 + bf16)
    accs = 2 * T * H * 4 + T * H * 2            # f32 conv accumulators + bf16 copy
    return io + xcat + taps + accs


def _weights_vmem_bytes(cin, H):
    wb = (3 * cin * H + 3 * H * H + H * NC_PAD) * 2    # bf16 weights
    bb = (2 * H + NC_PAD) * 4                          # f32 biases
    return 2 * (wb + bb)                               # default double buffering


def hms_model_1d_forward(eeg_nct, mask_nct, params, *, row_block=ROW_BLOCK):
    """eeg_nct: (B, C, T) f32, mask_nct: (B, C, T) 0/1. Returns (B, NC) f32 logits."""
    w1, b1, w2, b2, w3, b3 = params
    B, C, T = eeg_nct.shape
    K, Cin, H = w1.shape
    NC = w3.shape[1]
    assert K == 3 and Cin == 2 * C

    # Inputs feed the kernel in their native NCT layout (no wrapper transpose);
    # the 0/1 cqf mask ships as bf16 to halve its HBM traffic.
    eeg = eeg_nct.astype(jnp.float32)
    msk = mask_nct.astype(MASK_DTYPE)

    # ---- generation-aware tile sizing ----------------------------------------
    cap = _vmem_capacity_bytes()
    row_bytes = _per_row_vmem_bytes(C, T, H)
    w_bytes = _weights_vmem_bytes(Cin, H)
    budget_rows = (int(cap * 0.6) - w_bytes) // max(row_bytes, 1)
    tb = int(max(1, min(row_block, B, budget_rows)))
    if B >= 2 and -(-B // tb) < 2:
        tb = -(-B // 2)          # >= 2 parallel grid steps so v7x's 2nd TC has work
    Bp = -(-B // tb) * tb
    if Bp != B:                  # padded rows compute garbage logits, sliced off below
        pad = ((0, Bp - B), (0, 0), (0, 0))
        eeg = jnp.pad(eeg, pad)
        msk = jnp.pad(msk, pad)

    # ---- parameter packing (tap-major conv weights, lane-dense head) ----------
    w1_k = w1.astype(MXU_DTYPE)                                     # (3, 2C, H)
    w2_k = w2.astype(MXU_DTYPE)                                     # (3, H, H)
    w3_p = jnp.zeros((H, NC_PAD), MXU_DTYPE).at[:, :NC].set(w3.astype(MXU_DTYPE))
    b1_k = b1.reshape(1, H).astype(jnp.float32)
    b2_k = b2.reshape(1, H).astype(jnp.float32)
    b3_p = jnp.zeros((1, NC_PAD), jnp.float32).at[:, :NC].set(
        b3.reshape(1, NC).astype(jnp.float32))

    def _rep(arr):
        # Constant operand: same whole-array block on every grid step.
        # TODO(synk): pipeline_mode=pl.Buffered(1) would drop the idle second
        # buffer for these; negligible at this hidden size, left at the default.
        return pl.BlockSpec(arr.shape, lambda i, _n=arr.ndim: (0,) * _n)

    est = w_bytes + tb * row_bytes + 4 * tb * NC_PAD * 4
    vmem_limit = int(min(int(cap * 0.75), max(2 * est, 32 << 20)))

    out = pl.pallas_call(
        _hms_kernel,
        out_shape=jax.ShapeDtypeStruct((Bp, 1, NC_PAD), jnp.float32),
        grid_spec=pltpu.PrefetchScalarGridSpec(
            num_scalar_prefetch=0,
            grid=(Bp // tb,),
            in_specs=[
                pl.BlockSpec((tb, C, T), lambda i: (i, 0, 0)),   # eeg rows (NCT)
                pl.BlockSpec((tb, C, T), lambda i: (i, 0, 0)),   # cqf mask rows
                _rep(w1_k), _rep(b1_k),
                _rep(w2_k), _rep(b2_k),
                _rep(w3_p), _rep(b3_p),
            ],
            out_specs=pl.BlockSpec((tb, 1, NC_PAD), lambda i: (i, 0, 0)),
        ),
        compiler_params=pltpu.CompilerParams(
            dimension_semantics=("parallel",),
            vmem_limit_bytes=vmem_limit),
    )(eeg, msk, w1_k, b1_k, w2_k, b2_k, w3_p, b3_p)

    return out[:B, 0, :NC]


def _reference_forward(eeg_nct, mask_nct, params, mxu_dtype=jnp.float32):
    """Pure-JAX reference of the module forward.
    mxu_dtype=bfloat16 mirrors the kernel's MXU input policy (f32 accumulation)."""
    w1, b1, w2, b2, w3, b3 = params
    x = jnp.transpose(jnp.concatenate([eeg_nct, mask_nct], axis=1), (0, 2, 1))

    def conv(x_btc, w, b):
        T = x_btc.shape[1]
        K = w.shape[0]
        pad = (K - 1) // 2
        xp = jnp.pad(x_btc, ((0, 0), (pad, pad), (0, 0)))
        y = jnp.broadcast_to(b, (x_btc.shape[0], T, w.shape[2])).astype(jnp.float32)
        for k in range(K):
            y = y + jnp.einsum("btc,cd->btd",
                               xp[:, k:k + T, :].astype(mxu_dtype),
                               w[k].astype(mxu_dtype),
                               preferred_element_type=jnp.float32)
        return y

    h = jax.nn.relu(conv(x, w1, b1))
    h = jax.nn.relu(conv(h, w2, b2))
    feat = jnp.mean(h, axis=1)
    return jnp.dot(feat.astype(mxu_dtype), w3.astype(mxu_dtype),
                   preferred_element_type=jnp.float32) + b3


if __name__ == "__main__":
    # Small shapes consistent with the module's forward:
    B, C, T = 2, 4, 16          # batch, eeg channels, time samples
    H, NC = 32, 6               # encoder hidden channels, HMS classes
    Cin = 2 * C                 # eeg + mask concatenated (cfg.input_mask=True)

    key = jax.random.PRNGKey(0)
    k_eeg, k_mask, k1, k2, k3, k4, k5, k6 = jax.random.split(key, 8)

    eeg = jax.random.normal(k_eeg, (B, C, T), dtype=jnp.float32)
    mask = (jax.random.uniform(k_mask, (B, C, T)) > 0.2).astype(jnp.float32)

    # Deterministic synthetic parameters (no checkpoint loading).
    w1 = 0.1 * jax.random.normal(k1, (3, Cin, H), dtype=jnp.float32)
    b1 = 0.01 * jax.random.normal(k2, (1, H), dtype=jnp.float32)
    w2 = 0.1 * jax.random.normal(k3, (3, H, H), dtype=jnp.float32)
    b2 = 0.01 * jax.random.normal(k4, (1, H), dtype=jnp.float32)
    w3 = 0.1 * jax.random.normal(k5, (H, NC), dtype=jnp.float32)
    b3 = 0.01 * jax.random.normal(k6, (1, NC), dtype=jnp.float32)
    params = (w1, b1, w2, b2, w3, b3)

    out = jax.block_until_ready(hms_model_1d_forward(eeg, mask, params))
    assert out.shape == (B, NC), out.shape

    # Tight check against a reference mirroring the bf16-MXU / f32-accum policy.
    ref_mixed = jax.block_until_ready(
        _reference_forward(eeg, mask, params, mxu_dtype=MXU_DTYPE))
    assert jnp.allclose(out, ref_mixed, atol=5e-3, rtol=5e-3), (out, ref_mixed)

    # Loose check against pure-f32 module semantics (bf16 rounding budget).
    ref_f32 = jax.block_until_ready(_reference_forward(eeg, mask, params))
    assert jnp.allclose(out, ref_f32, atol=5e-2, rtol=5e-2), (out, ref_f32)

    print("KERNEL_OK")
</pallas_src>

<mosaic_0001>
module attributes {stable_mosaic.version = 11 : i64} {
  func.func @_hms_kernel(%arg0: i32, %arg1: memref<1x4x16xf32, #tpu.memory_space<vmem>>, %arg2: memref<1x4x16xbf16, #tpu.memory_space<vmem>>, %arg3: memref<3x8x32xbf16, #tpu.memory_space<vmem>>, %arg4: memref<1x32xf32, #tpu.memory_space<vmem>>, %arg5: memref<3x32x32xbf16, #tpu.memory_space<vmem>>, %arg6: memref<1x32xf32, #tpu.memory_space<vmem>>, %arg7: memref<32x128xbf16, #tpu.memory_space<vmem>>, %arg8: memref<1x128xf32, #tpu.memory_space<vmem>>, %arg9: memref<1x1x128xf32, #tpu.memory_space<vmem>>) attributes {dimension_semantics = [#tpu.dimension_semantics<parallel>], iteration_bounds = array<i64: 2>, scalar_prefetch = 0 : i64, scratch_operands = 0 : i64, tpu.core_type = #tpu.core_type<tc>, window_params = [{transform_indices = @transform_0, window_bounds = array<i64: 1, 4, 16>}, {transform_indices = @transform_1, window_bounds = array<i64: 1, 4, 16>}, {pipeline_mode = #tpu.pipeline_mode<synchronous>, transform_indices = @transform_2, window_bounds = array<i64: 3, 8, 32>}, {pipeline_mode = #tpu.pipeline_mode<synchronous>, transform_indices = @transform_3, window_bounds = array<i64: 1, 32>}, {pipeline_mode = #tpu.pipeline_mode<synchronous>, transform_indices = @transform_4, window_bounds = array<i64: 3, 32, 32>}, {pipeline_mode = #tpu.pipeline_mode<synchronous>, transform_indices = @transform_5, window_bounds = array<i64: 1, 32>}, {pipeline_mode = #tpu.pipeline_mode<synchronous>, transform_indices = @transform_6, window_bounds = array<i64: 32, 128>}, {pipeline_mode = #tpu.pipeline_mode<synchronous>, transform_indices = @transform_7, window_bounds = array<i64: 1, 128>}, {transform_indices = @transform_8, window_bounds = array<i64: 1, 1, 128>}]} {
    %c0 = arith.constant 0 : index
    %c0_0 = arith.constant 0 : index
    %c0_1 = arith.constant 0 : index
    %0 = vector.load %arg1[%c0, %c0_0, %c0_1] : memref<1x4x16xf32, #tpu.memory_space<vmem>>, vector<1x4x16xf32>
    %c0_2 = arith.constant 0 : index
    %c0_3 = arith.constant 0 : index
    %c0_4 = arith.constant 0 : index
    %1 = vector.load %arg2[%c0_2, %c0_3, %c0_4] : memref<1x4x16xbf16, #tpu.memory_space<vmem>>, vector<1x4x16xbf16>
    %2 = arith.extf %1 : vector<1x4x16xbf16> to vector<1x4x16xf32>
    %3 = tpu.concatenate %0, %2 in 1 : vector<1x4x16xf32>, vector<1x4x16xf32> -> vector<1x8x16xf32>
    %4 = tpu.transpose %3, [0, 2, 1] : vector<1x8x16xf32> -> vector<1x16x8xf32>
    %5 = vector.shape_cast %4 : vector<1x16x8xf32> to vector<16x8xf32>
    %6 = tpu.iota {dimensions = array<i32: 1>} : vector<1x16x1xi32>
    %7 = vector.shape_cast %6 : vector<1x16x1xi32> to vector<16x1xi32>
    %c0_i32 = arith.constant 0 : i32
    %8 = vector.broadcast %c0_i32 : i32 to vector<16x1xi32>
    %9 = arith.cmpi sgt, %7, %8 : vector<16x1xi32>
    %10 = arith.extui %9 : vector<16x1xi1> to vector<16x1xi32>
    %11 = arith.sitofp %10 : vector<16x1xi32> to vector<16x1xf32>
    %c15_i32 = arith.constant 15 : i32
    %12 = vector.broadcast %c15_i32 : i32 to vector<16x1xi32>
    %13 = arith.cmpi slt, %7, %12 : vector<16x1xi32>
    %14 = arith.extui %13 : vector<16x1xi1> to vector<16x1xi32>
    %15 = arith.sitofp %14 : vector<16x1xi32> to vector<16x1xf32>
    %c1_i32 = arith.constant 1 : i32
    %16 = tpu.dynamic_rotate %5 by %c1_i32 dim 0 : vector<16x8xf32>, i32 -> vector<16x8xf32>
    %17 = vector.broadcast %11 : vector<16x1xf32> to vector<16x8xf32>
    %18 = arith.mulf %16, %17 : vector<16x8xf32>
    %c15_i32_5 = arith.constant 15 : i32
    %19 = tpu.dynamic_rotate %5 by %c15_i32_5 dim 0 : vector<16x8xf32>, i32 -> vector<16x8xf32>
    %20 = vector.broadcast %15 : vector<16x1xf32> to vector<16x8xf32>
    %21 = arith.mulf %19, %20 : vector<16x8xf32>
    %22 = arith.truncf %18 : vector<16x8xf32> to vector<16x8xbf16>
    %c0_6 = arith.constant 0 : index
    %c0_7 = arith.constant 0 : index
    %c0_8 = arith.constant 0 : index
    %23 = vector.load %arg3[%c0_6, %c0_7, %c0_8] : memref<3x8x32xbf16, #tpu.memory_space<vmem>>, vector<1x8x32xbf16>
    %24 = vector.shape_cast %23 : vector<1x8x32xbf16> to vector<8x32xbf16>
    %cst = arith.constant dense<0.000000e+00> : vector<16x32xf32>
    %25 = tpu.matmul %22, %24, %cst {dimension_numbers = #tpu.dot_dimension_numbers<[1], [0], [0], [1], [0, 0, 1, 1], [], []>} : vector<16x8xbf16>, vector<8x32xbf16>, vector<16x32xf32> -> vector<16x32xf32>
    %26 = arith.truncf %5 : vector<16x8xf32> to vector<16x8xbf16>
    %c1 = arith.constant 1 : index
    %c0_9 = arith.constant 0 : index
    %c0_10 = arith.constant 0 : index
    %27 = vector.load %arg3[%c1, %c0_9, %c0_10] : memref<3x8x32xbf16, #tpu.memory_space<vmem>>, vector<1x8x32xbf16>
    %28 = vector.shape_cast %27 : vector<1x8x32xbf16> to vector<8x32xbf16>
    %cst_11 = arith.constant dense<0.000000e+00> : vector<16x32xf32>
    %29 = tpu.matmul %26, %28, %cst_11 {dimension_numbers = #tpu.dot_dimension_numbers<[1], [0], [0], [1], [0, 0, 1, 1], [], []>} : vector<16x8xbf16>, vector<8x32xbf16>, vector<16x32xf32> -> vector<16x32xf32>
    %30 = arith.addf %25, %29 : vector<16x32xf32>
    %31 = arith.truncf %21 : vector<16x8xf32> to vector<16x8xbf16>
    %c2 = arith.constant 2 : index
    %c0_12 = arith.constant 0 : index
    %c0_13 = arith.constant 0 : index
    %32 = vector.load %arg3[%c2, %c0_12, %c0_13] : memref<3x8x32xbf16, #tpu.memory_space<vmem>>, vector<1x8x32xbf16>
    %33 = vector.shape_cast %32 : vector<1x8x32xbf16> to vector<8x32xbf16>
    %cst_14 = arith.constant dense<0.000000e+00> : vector<16x32xf32>
    %34 = tpu.matmul %31, %33, %cst_14 {dimension_numbers = #tpu.dot_dimension_numbers<[1], [0], [0], [1], [0, 0, 1, 1], [], []>} : vector<16x8xbf16>, vector<8x32xbf16>, vector<16x32xf32> -> vector<16x32xf32>
    %35 = arith.addf %30, %34 : vector<16x32xf32>
    %c0_15 = arith.constant 0 : index
    %c0_16 = arith.constant 0 : index
    %36 = vector.load %arg4[%c0_15, %c0_16] : memref<1x32xf32, #tpu.memory_space<vmem>>, vector<1x32xf32>
    %37 = vector.broadcast %36 : vector<1x32xf32> to vector<16x32xf32>
    %38 = arith.addf %35, %37 : vector<16x32xf32>
    %cst_17 = arith.constant 0.000000e+00 : f32
    %39 = vector.broadcast %cst_17 : f32 to vector<16x32xf32>
    %40 = arith.maximumf %38, %39 : vector<16x32xf32>
    %c1_i32_18 = arith.constant 1 : i32
    %41 = tpu.dynamic_rotate %40 by %c1_i32_18 dim 0 : vector<16x32xf32>, i32 -> vector<16x32xf32>
    %42 = vector.broadcast %11 : vector<16x1xf32> to vector<16x32xf32>
    %43 = arith.mulf %41, %42 : vector<16x32xf32>
    %c15_i32_19 = arith.constant 15 : i32
    %44 = tpu.dynamic_rotate %40 by %c15_i32_19 dim 0 : vector<16x32xf32>, i32 -> vector<16x32xf32>
    %45 = vector.broadcast %15 : vector<16x1xf32> to vector<16x32xf32>
    %46 = arith.mulf %44, %45 : vector<16x32xf32>
    %47 = arith.truncf %43 : vector<16x32xf32> to vector<16x32xbf16>
    %c0_20 = arith.constant 0 : index
    %c0_21 = arith.constant 0 : index
    %c0_22 = arith.constant 0 : index
    %48 = vector.load %arg5[%c0_20, %c0_21, %c0_22] : memref<3x32x32xbf16, #tpu.memory_space<vmem>>, vector<1x32x32xbf16>
    %49 = vector.shape_cast %48 : vector<1x32x32xbf16> to vector<32x32xbf16>
    %cst_23 = arith.constant dense<0.000000e+00> : vector<16x32xf32>
    %50 = tpu.matmul %47, %49, %cst_23 {dimension_numbers = #tpu.dot_dimension_numbers<[1], [0], [0], [1], [0, 0, 1, 1], [], []>} : vector<16x32xbf16>, vector<32x32xbf16>, vector<16x32xf32> -> vector<16x32xf32>
    %51 = arith.truncf %40 : vector<16x32xf32> to vector<16x32xbf16>
    %c1_24 = arith.constant 1 : index
    %c0_25 = arith.constant 0 : index
    %c0_26 = arith.constant 0 : index
    %52 = vector.load %arg5[%c1_24, %c0_25, %c0_26] : memref<3x32x32xbf16, #tpu.memory_space<vmem>>, vector<1x32x32xbf16>
    %53 = vector.shape_cast %52 : vector<1x32x32xbf16> to vector<32x32xbf16>
    %cst_27 = arith.constant dense<0.000000e+00> : vector<16x32xf32>
    %54 = tpu.matmul %51, %53, %cst_27 {dimension_numbers = #tpu.dot_dimension_numbers<[1], [0], [0], [1], [0, 0, 1, 1], [], []>} : vector<16x32xbf16>, vector<32x32xbf16>, vector<16x32xf32> -> vector<16x32xf32>
    %55 = arith.addf %50, %54 : vector<16x32xf32>
    %56 = arith.truncf %46 : vector<16x32xf32> to vector<16x32xbf16>
    %c2_28 = arith.constant 2 : index
    %c0_29 = arith.constant 0 : index
    %c0_30 = arith.constant 0 : index
    %57 = vector.load %arg5[%c2_28, %c0_29, %c0_30] : memref<3x32x32xbf16, #tpu.memory_space<vmem>>, vector<1x32x32xbf16>
    %58 = vector.shape_cast %57 : vector<1x32x32xbf16> to vector<32x32xbf16>
    %cst_31 = arith.constant dense<0.000000e+00> : vector<16x32xf32>
    %59 = tpu.matmul %56, %58, %cst_31 {dimension_numbers = #tpu.dot_dimension_numbers<[1], [0], [0], [1], [0, 0, 1, 1], [], []>} : vector<16x32xbf16>, vector<32x32xbf16>, vector<16x32xf32> -> vector<16x32xf32>
    %60 = arith.addf %55, %59 : vector<16x32xf32>
    %c0_32 = arith.constant 0 : index
    %c0_33 = arith.constant 0 : index
    %61 = vector.load %arg6[%c0_32, %c0_33] : memref<1x32xf32, #tpu.memory_space<vmem>>, vector<1x32xf32>
    %62 = vector.broadcast %61 : vector<1x32xf32> to vector<16x32xf32>
    %63 = arith.addf %60, %62 : vector<16x32xf32>
    %cst_34 = arith.constant 0.000000e+00 : f32
    %64 = vector.broadcast %cst_34 : f32 to vector<16x32xf32>
    %65 = arith.maximumf %63, %64 : vector<16x32xf32>
    %66 = vector.shape_cast %65 : vector<16x32xf32> to vector<1x16x32xf32>
    %cst_35 = arith.constant dense<0.000000e+00> : vector<1x32xf32>
    %67 = vector.multi_reduction <add>, %66, %cst_35 [1] : vector<1x16x32xf32> to vector<1x32xf32>
    %cst_36 = arith.constant 1.600000e+01 : f32
    %68 = vector.broadcast %cst_36 : f32 to vector<1x32xf32>
    %69 = arith.divf %67, %68 : vector<1x32xf32>
    %70 = arith.truncf %69 : vector<1x32xf32> to vector<1x32xbf16>
    %c0_37 = arith.constant 0 : index
    %c0_38 = arith.constant 0 : index
    %71 = vector.load %arg7[%c0_37, %c0_38] : memref<32x128xbf16, #tpu.memory_space<vmem>>, vector<32x128xbf16>
    %cst_39 = arith.constant dense<0.000000e+00> : vector<1x128xf32>
    %72 = tpu.matmul %70, %71, %cst_39 {dimension_numbers = #tpu.dot_dimension_numbers<[1], [0], [0], [1], [0, 0, 1, 1], [], []>} : vector<1x32xbf16>, vector<32x128xbf16>, vector<1x128xf32> -> vector<1x128xf32>
    %c0_40 = arith.constant 0 : index
    %c0_41 = arith.constant 0 : index
    %73 = vector.load %arg8[%c0_40, %c0_41] : memref<1x128xf32, #tpu.memory_space<vmem>>, vector<1x128xf32>
    %74 = arith.addf %72, %73 : vector<1x128xf32>
    %75 = vector.shape_cast %74 : vector<1x128xf32> to vector<1x1x128xf32>
    %c0_42 = arith.constant 0 : index
    %c0_43 = arith.constant 0 : index
    %c0_44 = arith.constant 0 : index
    %76 = vector.load %arg9[%c0_42, %c0_43, %c0_44] : memref<1x1x128xf32, #tpu.memory_space<vmem>>, vector<1x1x128xf32>
    tpu.vector_store %arg9[%c0_42, %c0_43, %c0_44], %75 {strides = array<i32>} : memref<1x1x128xf32, #tpu.memory_space<vmem>>, vector<1x1x128xf32>,
    return
  }
  func.func @transform_0(%arg0: i32) -> (i32, i32, i32) {
    %c0_i32 = arith.constant 0 : i32
    %c0_i32_0 = arith.constant 0 : i32
    %c0_i32_1 = arith.constant 0 : i32
    return %arg0, %c0_i32, %c0_i32_0 : i32, i32, i32
  }
  func.func @transform_1(%arg0: i32) -> (i32, i32, i32) {
    %c0_i32 = arith.constant 0 : i32
    %c0_i32_0 = arith.constant 0 : i32
    %c0_i32_1 = arith.constant 0 : i32
    return %arg0, %c0_i32, %c0_i32_0 : i32, i32, i32
  }
  func.func @transform_2(%arg0: i32) -> (i32, i32, i32) {
    %c0_i32 = arith.constant 0 : i32
    %c0_i32_0 = arith.constant 0 : i32
    %c0_i32_1 = arith.constant 0 : i32
    %c0_i32_2 = arith.constant 0 : i32
    return %c0_i32, %c0_i32_0, %c0_i32_1 : i32, i32, i32
  }
  func.func @transform_3(%arg0: i32) -> (i32, i32) {
    %c0_i32 = arith.constant 0 : i32
    %c0_i32_0 = arith.constant 0 : i32
    %c0_i32_1 = arith.constant 0 : i32
    return %c0_i32, %c0_i32_0 : i32, i32
  }
  func.func @transform_4(%arg0: i32) -> (i32, i32, i32) {
    %c0_i32 = arith.constant 0 : i32
    %c0_i32_0 = arith.constant 0 : i32
    %c0_i32_1 = arith.constant 0 : i32
    %c0_i32_2 = arith.constant 0 : i32
    return %c0_i32, %c0_i32_0, %c0_i32_1 : i32, i32, i32
  }
  func.func @transform_5(%arg0: i32) -> (i32, i32) {
    %c0_i32 = arith.constant 0 : i32
    %c0_i32_0 = arith.constant 0 : i32
    %c0_i32_1 = arith.constant 0 : i32
    return %c0_i32, %c0_i32_0 : i32, i32
  }
  func.func @transform_6(%arg0: i32) -> (i32, i32) {
    %c0_i32 = arith.constant 0 : i32
    %c0_i32_0 = arith.constant 0 : i32
    %c0_i32_1 = arith.constant 0 : i32
    return %c0_i32, %c0_i32_0 : i32, i32
  }
  func.func @transform_7(%arg0: i32) -> (i32, i32) {
    %c0_i32 = arith.constant 0 : i32
    %c0_i32_0 = arith.constant 0 : i32
    %c0_i32_1 = arith.constant 0 : i32
    return %c0_i32, %c0_i32_0 : i32, i32
  }
  func.func @transform_8(%arg0: i32) -> (i32, i32, i32) {
    %c0_i32 = arith.constant 0 : i32
    %c0_i32_0 = arith.constant 0 : i32
    %c0_i32_1 = arith.constant 0 : i32
    return %arg0, %c0_i32, %c0_i32_0 : i32, i32, i32
  }
}

</mosaic_0001>

<bundles_post_ra>
// kernel: tpu_custom_call.1
= control target key start
LH: loop header
LB: loop body
LE: loop exit
PB: predicated region body
PF: predicated region fallthrough
CT: control target
= control target key end

     0   :  { %s1827_s0 = inlined_call_operand.hbm [shape: f32[2,4,16], index: 0, kind: input, shape index: {}]   ;;  %s1828_s1 = inlined_call_operand.hbm [shape: bf16[2,4,16], index: 1, kind: input, shape index: {}]   ;;  %s1829_s2 = inlined_call_operand.hbm [shape: bf16[3,8,32], index: 2, kind: input, shape index: {}]   ;;  %s1830_s3 = inlined_call_operand.vmem [shape: f32[1,32], index: 3, kind: input, shape index: {}]   ;;  %s1831_s4 = inlined_call_operand.hbm [shape: bf16[3,32,32], index: 4, kind: input, shape index: {}]   ;;  %s1832_s5 = inlined_call_operand.vmem [shape: f32[1,32], index: 5, kind: input, shape index: {}]   ;;  %s1833_s6 = inlined_call_operand.hbm [shape: bf16[32,128], index: 6, kind: input, shape index: {}]   ;;  %s1834_s7 = inlined_call_operand.vmem [shape: f32[1,128], index: 7, kind: input, shape index: {}]   ;;  %s1835_s8 = inlined_call_operand.hbm [shape: f32[2,1,128], index: 8, kind: output, shape index: {}]  }
   0x1   :  { %1840 = sst [smem:[#allocation17_spill]] %s1827_s0 }
   0x2   :  { %1841 = sst [smem:[#allocation18_spill]] %s1829_s2 }
   0x3   :  { %1842 = sst [smem:[#allocation19_spill]] %s1831_s4 }
   0x4   :  { %1843 = sst [smem:[#allocation20_spill]] %s1833_s6 }
   0x5   :  { %13 = vsyncpa [#allocation3], 0 }
   0x6   :  { %15 = vsyncpa [#allocation3 + $0x1], 0 }
   0x7   :  { %16 = vsyncpa [#allocation6], 0 }
   0x8   :  { %18 = vsyncpa [#allocation6 + $0x1], 0 }
   0x9   :  { %19 = vsyncpa [#allocation9], 0 }
   0xa   :  { %20 = vsyncpa [#allocation4], 0 }
   0xb   :  { %22 = vsyncpa [#allocation4 + $0x1], 0  ;;  %s1514_s27 = smov 0   ;;  %s1516_s28 = smov 0  }
   0xc   :  { %s1518_s29 = smov 0   ;;  %s1520_s30 = smov 0  }
   0xd LB: > { %s1535_s9 = sadd.s32 4294967295, %s1457_s30   ;;  %s1047_s10 = sadd.s32 4294967294, %s1457_s30   ;;  %s1457_s30 = sphi %s1520_s30, %s1868_s30   ;;  %s1453_s29 = sphi %s1518_s29, %s1867_s29   ;;  %s1449_s28 = sphi %s1516_s28, %s1866_s28   ;;  %s1445_s27 = sphi %s1514_s27, %s1865_s27  }
   0xe   : > { %p48_p0 = scmp.ne.s32.totalorder %s1449_s28, %s1445_s27  ;;  %p1836_p1 = scmp.eq.s32.totalorder %s1535_s9, 0 }
   0xf   : > { %p230_p3 = scmp.eq.s32.totalorder %s1047_s10, 1  ;;  %p1048_p5 = scmp.ge.s32.totalorder %s1457_s30, 1 }
  0x10   : > { %p1544_p4 = por %p1836_p1, %p48_p0  ;;  %p237_p7 = scmp.lt.s32.totalorder %s1457_s30, 3 }
  0x11   : > { %p1549_p6 = por %p230_p3, %p48_p0  ;;  %s1459_s14 = smov [#allocation7]  }
  0x12   : > { %s1844_s11 = scalar_select %p1544_p4, 1, 0 }
  0x13   : > { %s1845_s12 = scalar_select %p1549_p6, 1, 0 }
  0x14   : > { %p1554_p8 = pnand %p1048_p5, %p237_p7  ;;  %s249_s15 = sshll.u32 %s1459_s14, 4  ;;  %s250_s15 = int_to_ptr.vmem [resolvable:$true] %s249_s15 }
  0x15   : > { %s1460_s17 = smov [#allocation8]   ;;  %s1461_s19 = smov [#allocation10]  }
  0x16   : > { %s1846_s13 = scalar_select %p1554_p8, 1, 0 }
  0x17   : > { %p1171_p9 = pneg %p1554_p8  ;;  %s265_s18 = sshll.u32 %s1460_s17, 4  ;;  %s266_s18 = int_to_ptr.vmem [resolvable:$true] %s265_s18 }
  0x18   : > { %s281_s20 = sshll.u32 %s1461_s19, 4  ;;  %s1258_s21 = scalar_lea.vmem %s250_s15, 192  ;;  %s282_s20 = int_to_ptr.vmem [resolvable:$true] %s281_s20 }
  0x19   : > { %p1563_p11 = pnand %p1171_p9, %p1836_p1  ;;  %p1259_p13 = scmp.ne.s32.totalorder %s250_s15, %s1258_s21 }
  0x1a   : > { %p1266_p5 = scmp.lt.s32.totalorder %s250_s15, %s250_s15  ;;  %p1267_p7 = scmp.lt.s32.totalorder %s1258_s21, %s1258_s21 }
  0x1b   : > { %p1249_p12 = pneg %p1563_p11 }
  0x1c   : > { %p1268_p9 = por %p1267_p7, %p1266_p5 }
  0x1d   : > { %p1261_p0 = pnand %p1259_p13, %p1249_p12 }
  0x1f   : > { %p1262_p3 = pneg %p1261_p0 }
  0x21   : > { %p1269_p10 = pnand %p1268_p9, %p1262_p3 }
  0x23   : > { %1272 = shalt.err (!%p1269_p10)
}
  0x24   : > { %s1462_s22 = smov 64   ;;  %s1463_s23 = smov 4  }
  0x25   : > { %s1848_s2 = sld [smem:[#allocation18_spill]]  ;;  %s1284_s26 = scalar_lea.vmem %s266_s18, 768 }
  0x26   : > { %p1285_p1 = scmp.ne.s32.totalorder %s266_s18, %s1284_s26  ;;  %p1292_p2 = scmp.lt.s32.totalorder %s266_s18, %s266_s18 }
  0x27   : > { %p1293_p6 = scmp.lt.s32.totalorder %s1284_s26, %s1284_s26 }
  0x28   : > { %p1287_p13 = pnand %p1285_p1, %p1249_p12 }
  0x29   : > { %p1294_p5 = por %p1293_p6, %p1292_p2 }
  0x2a   : > { %p1288_p0 = pneg %p1287_p13 }
  0x2b   : > { %1174 = dma.hbm_to_vmem [thread:$0]  (!%p1563_p11), %s1848_s2, 192, %s250_s15, [#allocation6], %s1462_s22, %s1462_s22, %s1463_s23  }
  0x2c   : > { %p1295_p3 = pnand %p1294_p5, %p1288_p0 }
  0x2e   : > { %1298 = shalt.err (!%p1295_p3)
}
  0x2f   : > { %s1849_s4 = sld [smem:[#allocation19_spill]]  ;;  %s1310_s15 = scalar_lea.vmem %s282_s20, 256 }
  0x30   : > { %p1311_p10 = scmp.ne.s32.totalorder %s282_s20, %s1310_s15  ;;  %p1318_p9 = scmp.lt.s32.totalorder %s282_s20, %s282_s20 }
  0x31   : > { %p1319_p13 = scmp.lt.s32.totalorder %s1310_s15, %s1310_s15 }
  0x32   : > { %p1313_p7 = pnand %p1311_p10, %p1249_p12 }
  0x33   : > { %p1320_p4 = por %p1319_p13, %p1318_p9 }
  0x34   : > { %p1314_p1 = pneg %p1313_p7 }
  0x35   : > { %1177 = dma.hbm_to_vmem [thread:$0]  (!%p1563_p11), %s1849_s4, 768, %s266_s18, [#allocation9], %s1462_s22, %s1462_s22, %s1463_s23  }
  0x36   : > { %p1321_p2 = pnand %p1320_p4, %p1314_p1 }
  0x38   : > { %1324 = shalt.err (!%p1321_p2)
}
  0x39   : > { %s1850_s6 = sld [smem:[#allocation20_spill]]  ;;  %s1594_s18 = sadd.s32 1, %s1457_s30  }
  0x3a   : > { %s32_s21 = ssub.s32 %s1457_s30, %s1594_s18  ;;  %s35_s16 = sadd.s32 1, %s1453_s29 }
  0x3b   : > { %p33_p4 = scmp.eq.s32.totalorder %s32_s21, 0  ;;  %p42_p6 = scmp.ne.s32.totalorder %s1453_s29, %s1449_s28 }
  0x3c   : > { %p43_p12 = scmp.eq.s32.totalorder %s1457_s30, 0  ;;  %p1195_p0 = scmp.lt.s32.totalorder %s1457_s30, 2 }
  0x3d   : > { %s1604_s24 = scalar_select %p33_p4, %s1453_s29, %s35_s16  }
  0x3e   : > { %p44_p5 = por %p43_p12, %p42_p6  ;;  %p1851_p3 = scmp.eq.s32.totalorder %s1535_s9, 1 }
  0x3f   : > { %1180 = dma.hbm_to_vmem [thread:$0]  (!%p1563_p11), %s1850_s6, 256, %s282_s20, [#allocation9], %s1462_s22, %s1462_s22, %s1463_s23  }
  0x40   : > { %p1608_p10 = por %p1851_p3, %p42_p6  ;;  %s1613_s26 = sand.u32 1, %s1453_s29  }
  0x41   : > { %s1054_s20 = sshll.u32 %s1457_s30, 6  ;;  %s1053_s22 = sshll.u32 %s1613_s26, 2 }
  0x42   : > { %s1852_s25 = scalar_select %p1608_p10, 1, 0 }
  0x43   : > { %s1853_s0 = sld [smem:[#allocation17_spill]]  ;;  %s302_s15 = scalar_lea.vmem [#allocation2], %s1053_s22 }
  0x44   : > { %s309_s17 = sshll.u32 %s302_s15, 4  ;;  %p1622_p11 = pnand %p1195_p0, %p44_p5  ;;  %s310_s17 = int_to_ptr.vmem [resolvable:$true] %s309_s17 }
  0x45   : > { %s299_s16 = scalar_lea.sflag [#allocation3], %s1613_s26 }
  0x46   : > { %p1327_p1 = pneg %p1622_p11 }
  0x49   : > { %s1620_s14 = scalar_lea.hbm %s1853_s0, %s1054_s20  ;;  %s1330_s23 = scalar_lea.hbm %s1853_s0, 128 }
  0x4a   : > { %s1325_s2 = scalar_lea.hbm %s1620_s14, 64  ;;  %p1331_p2 = scmp.lt.s32.totalorder %s1620_s14, %s1853_s0 }
  0x4b   : > { %p1326_p7 = scmp.ne.s32.totalorder %s1620_s14, %s1325_s2  ;;  %p1332_p4 = scmp.lt.s32.totalorder %s1330_s23, %s1325_s2 }
  0x4d   : > { %p1328_p9 = pnand %p1327_p1, %p1326_p7  ;;  %p1333_p6 = por %p1332_p4, %p1331_p2 }
  0x4f   : > { %p1329_p13 = pneg %p1328_p9 }
  0x51   : > { %p1334_p12 = pnand %p1333_p6, %p1329_p13 }
  0x53   : > { %1337 = shalt.err (!%p1334_p12)
}
  0x54   : > { %s1338_s21 = scalar_lea.vmem %s310_s17, 64  ;;  %s1464_s4 = smov [#allocation2]  }
  0x55   : > { %p1339_p0 = scmp.ne.s32.totalorder %s310_s17, %s1338_s21  ;;  %s1343_s6 = sshll.u32 %s1464_s4, 4  ;;  %s1344_s6 = int_to_ptr.vmem [resolvable:$false] %s1343_s6 }
  0x56   : > { %s1345_s20 = scalar_lea.vmem %s1344_s6, 128  ;;  %p1346_p7 = scmp.lt.s32.totalorder %s310_s17, %s1344_s6 }
  0x57   : > { %p1341_p5 = pnand %p1339_p0, %p1327_p1  ;;  %p1347_p9 = scmp.lt.s32.totalorder %s1345_s20, %s1338_s21 }
  0x59   : > { %p1342_p3 = pneg %p1341_p5  ;;  %p1348_p10 = por %p1347_p9, %p1346_p7 }
  0x5b   : > { %p1349_p8 = pnand %p1348_p10, %p1342_p3 }
  0x5d   : > { %1352 = shalt.err (!%p1349_p8)
}
  0x5e   : > { %1184 = dma.hbm_to_vmem [thread:$0]  (!%p1622_p11), %s1620_s14, 64, %s310_s17, %s299_s16  }
  0x5f   : > { %s1055_s2 = sshll.u32 %s1613_s26, 1  ;;  %s1056_s22 = sshll.u32 %s1457_s30, 5 }
  0x60   : > { %s1653_s4 = scalar_lea.hbm %s1828_s1, %s1056_s22  ;;  %s320_s6 = scalar_lea.vmem [#allocation5], %s1055_s2 }
  0x61   : > { %s327_s21 = sshll.u32 %s320_s6, 4  ;;  %s1855_s15 = sand.u32 1, %s1457_s30   ;;  %s328_s21 = int_to_ptr.vmem [resolvable:$true] %s327_s21 }
  0x62   : > { %s317_s20 = scalar_lea.sflag [#allocation6], %s1855_s15  ;;  %s1353_s0 = scalar_lea.hbm %s1653_s4, 32 }
  0x63   : > { %p1354_p8 = scmp.ne.s32.totalorder %s1653_s4, %s1353_s0  ;;  %s1358_s17 = scalar_lea.hbm %s1828_s1, 64 }
  0x64   : > { %p1359_p2 = scmp.lt.s32.totalorder %s1653_s4, %s1828_s1  ;;  %p1360_p4 = scmp.lt.s32.totalorder %s1358_s17, %s1353_s0 }
  0x65   : > { %p1356_p10 = pnand %p1354_p8, %p1327_p1 }
  0x66   : > { %p1361_p6 = por %p1360_p4, %p1359_p2 }
  0x67   : > { %p1357_p13 = pneg %p1356_p10 }
  0x69   : > { %p1362_p12 = pnand %p1361_p6, %p1357_p13 }
  0x6b   : > { %1365 = shalt.err (!%p1362_p12)
}
  0x6c   : > { %s1366_s2 = scalar_lea.vmem %s328_s21, 32  ;;  %s1465_s23 = smov [#allocation5]  }
  0x6d   : > { %p1367_p0 = scmp.ne.s32.totalorder %s328_s21, %s1366_s2  ;;  %s1371_s10 = sshll.u32 %s1465_s23, 4  ;;  %s1372_s10 = int_to_ptr.vmem [resolvable:$false] %s1371_s10 }
  0x6e   : > { %s1373_s6 = scalar_lea.vmem %s1372_s10, 64  ;;  %p1374_p7 = scmp.lt.s32.totalorder %s328_s21, %s1372_s10 }
  0x6f   : > { %p1369_p5 = pnand %p1367_p0, %p1327_p1  ;;  %p1375_p9 = scmp.lt.s32.totalorder %s1373_s6, %s1366_s2 }
  0x71   : > { %p1370_p3 = pneg %p1369_p5  ;;  %p1376_p8 = por %p1375_p9, %p1374_p7 }
  0x73   : > { %p1377_p10 = pnand %p1376_p8, %p1370_p3 }
  0x75   : > { %1380 = shalt.err (!%p1377_p10)
}
  0x76   : > { %1187 = dma.hbm_to_vmem [thread:$0]  (!%p1622_p11), %s1653_s4, 32, %s328_s21, %s317_s20  }
  0x77   : > { %p1856_p13 = scmp.ne.s32.totalorder %s1846_s13, 0 }
  0x78   : > { %s1678_s0 = sand.u32 (!%p1856_p13), 1, %s1449_s28   ;;  %p1857_p1 = scmp.ne.s32.totalorder (!%p1856_p13), %s1844_s11, 0 }
  0x79   : > { %336 = sbr.rel (%p1856_p13) target bundleno = 927 (0x39f), region = 52  ;;  %s1058_s15 = sshll.u32 (!%p1856_p13), %s1678_s0, 2 }
  0x7a   : > { %s339_s26 = scalar_lea.sflag (!%p1856_p13), [#allocation3], %s1678_s0  ;;  %s342_s14 = scalar_lea.vmem (!%p1856_p13), [#allocation2], %s1058_s15 }
  0x7e   : > { %1424 = dma.done.wait (%p1857_p1), %s339_s26, 64  }
  0x7f   : > { %1426 = vsyncadd (%p1857_p1), %s339_s26, 4294967232  ;;  %s347_s19 = sand.u32 1, %s1535_s9   ;;  %s1059_s13 = sshll.u32 %s1678_s0, 1 }
  0x80   : > { %s348_s4 = scalar_lea.sflag [#allocation6], %s347_s19  ;;  %s351_s21 = scalar_lea.vmem [#allocation5], %s1059_s13 }
  0x81   : > { %1428 = dma.done.wait (%p1857_p1), %s348_s4, 32  }
  0x82   : > { %1430 = vsyncadd (%p1857_p1), %s348_s4, 4294967264  ;;  %p1858_p11 = scmp.eq.s32.totalorder %s1535_s9, 0 }
  0x84   : > { %1432 = dma.done.wait (%p1858_p11), [#allocation6], 192   ;;  %p1859_p2 = pmov %p1858_p11 }
  0x86   : > { %1434 = vsyncadd (%p1859_p2), [#allocation6], 4294967104  ;;  %p1860_p4 = pmov %p1859_p2 }
  0x87   : > { %p1861_p6 = pmov %p1859_p2 }
  0x88   : > { %1436 = dma.done.wait (%p1860_p4), [#allocation9], 1024  }
  0x89   : > { %1438 = vsyncadd (%p1861_p6), [#allocation9], 4294966272  ;;  %vm407_vm0 = vcmask 1043456   ;;  %v401_v0 = vld [vmem:[%s342_s14] sm:$0xf]  ;;  %v1466_v5 = vmov 0.0   ;;  %v441_v10 = vlaneseq }
  0x8a   : > { %v402_v1 = vld [vmem:[%s351_s21] sm:$0x3]  ;;  %v474_v4 = vld [vmem:[#allocation7 + $0x4] sm:$0xf]  ;;  %1103 = vmatprep.subr.bf16.mxu0 %v1466_v5  ;;  %1109 = vmatprep.subr.bf16.mxu1 %v1466_v5  ;;  %vm1467_vm1 = vmmov 0   ;;  %vm475_vm6 = vcmask 64512  }
  0x8b   : > { %v403_v2 = vunpack.c.l.bf16 %v402_v1  ;;  %v480_v6 = vsel %vm407_vm0, %v474_v4, 0  ;;  %1105 = vmatprep.mubr.msk.bf16.mxu0 %vm1467_vm1, %v1466_v5  ;;  %1111 = vmatprep.mubr.msk.bf16.mxu1 %vm1467_vm1, %v1466_v5  ;;  %v471_v8 = vld [vmem:[#allocation7] sm:$0xf]  ;;  %v1711_v11 = vshrl.u32 %v441_v10, 7  ;;  %v572_v14 = vld [vmem:[#allocation7 + $0x8] sm:$0xf] }
  0x8c   : > { %1104 = vmatpush3.bf16.msra.mxu0 %v480_v6  ;;  %v527_v9 = vsel %vm407_vm0, %v471_v8, 0  ;;  %v577_v18 = vsel %vm407_vm0, %v572_v14, 0  ;;  %v1239_v32 = vld [vmem:[#allocation8 + $0x18] sm:$0xff]   ;;  %v1240_v33 = vld [vmem:[#allocation8 + $0x10] sm:$0xff]   ;;  %v1241_v34 = vld [vmem:[#allocation8 + $0x8] sm:$0xff]   ;;  %vm668_vm7 = vcmask 261120  }
  0x8d   : > { %v405_v3 = vcombine.low %v403_v2, %v403_v2  ;;  %1115 = vmatprep.subr.bf16.mxu0 %v1466_v5  ;;  %1110 = vmatpush3.bf16.msra.mxu1 %v527_v9  ;;  %v443_v12 = vadd.s32 8, %v1711_v11  ;;  %vm444_vm2 = vcmp.gt.s32.totalorder %v1711_v11, 0  ;;  %vm458_vm4 = vcmp.lt.s32.totalorder %v1711_v11, 1  ;;  %v1243_v35 = vld [vmem:[#allocation8] sm:$0xff]   ;;  %v1068_v44 = vld [vmem:[%s1830_s3] ss:$0 sm:$0xff] }
  0x8e   : > { %1121 = vmatprep.subr.bf16.mxu1 %v1466_v5  ;;  %vm465_vm5 = vcmp.lt.s32.totalorder %v1711_v11, 7  ;;  %v1718_v16 = vsel %vm444_vm2, 1.0, %v1466_v5  ;;  %v1242_v58 = vld [vmem:[#allocation8 + $0x28] sm:$0xff]   ;;  %v1244_v2 = vld [vmem:[#allocation8 + $0x20] sm:$0xff]   ;;  %v1245_v9 = vld [vmem:[#allocation10 + $0x8] sm:$0xff]   ;;  %s1082_s23 = sshll.u32 %s1535_s9, 4 }
  0x8f   : > { %v408_v7 = vsel %vm407_vm0, %v401_v0, %v405_v3  ;;  %vm451_vm3 = vcmp.lt.s32.totalorder %v443_v12, 15  ;;  %v1246_v10 = vld [vmem:[#allocation10] sm:$0xff]   ;;  %s399_s10 = scalar_lea.vmem [#allocation11], %s1678_s0  ;;  %s1784_s14 = scalar_lea.hbm %s1835_s8, %s1082_s23 }
  0x90   : > { %409 = vxpose.xlu0.b32.start.end [1/1] (short) (narrow) %v408_v7, 16  ;;  %v1722_v23 = vsel %vm451_vm3, 1.0, %v1466_v5  ;;  %s930_s6 = sshll.u32 %s399_s10, 4  ;;  %s918_s19 = scalar_lea.sflag [#allocation4], %s1678_s0  ;;  %s1786_s6 = int_to_ptr.vmem [resolvable:$true] %s930_s6 }
  0x91   : > { %s1381_s13 = scalar_lea.vmem %s1786_s6, 16  ;;  %p1862_p0 = scmp.ne.s32.totalorder %s1852_s25, 0 }
  0x92   : > { %p1382_p12 = scmp.ne.s32.totalorder %s1786_s6, %s1381_s13  ;;  %s1468_s9 = smov [#allocation11]  }
  0x93   : > { %s1385_s4 = sshll.u32 %s1468_s9, 4  ;;  %s1386_s4 = int_to_ptr.vmem [resolvable:$false] %s1385_s4 }
  0x94   : > { %p1383_p5 = pnand %p1382_p12, %p1862_p0  ;;  %s1387_s21 = scalar_lea.vmem %s1386_s4, 32 }
  0x95   : > { %p1388_p7 = scmp.lt.s32.totalorder %s1786_s6, %s1386_s4  ;;  %p1389_p9 = scmp.lt.s32.totalorder %s1387_s21, %s1381_s13 }
  0x96   : > { %p1384_p3 = pneg %p1383_p5 }
  0x97   : > { %p1390_p8 = por %p1389_p9, %p1388_p7 }
  0x99   : > { %p1391_p10 = pnand %p1390_p8, %p1384_p3 }
 0x10c   : > { %v425_v13 = vpop.trf.xlu0 }
 0x10d   : > { %v456_v15 = vrot.slane %v425_v13, 7  ;;  %v463_v19 = vrot.slane %v425_v13, 1 }
 0x110   : > { %v426_v17 = vpop.trf.xlu0 }
 0x111   : > { %v457_v20 = vrot.slane %v426_v17, 7  ;;  %v464_v21 = vrot.slane %v426_v17, 1  ;;  %v472_v22 = vpack.c.bf16 %v426_v17, %v425_v13 }
 0x113   : > { %v460_v24 = vsel %vm458_vm4, %v457_v20, %v456_v15  ;;  %v467_v25 = vsel %vm465_vm5, %v464_v21, %v463_v19  ;;  %1106 = vmatmul.mubr.msk.bf16.vlgmr.msra.gmra.mxu0 %vm475_vm6, %v472_v22  ;;  %v459_v27 = vsel %vm458_vm4, %v456_v15, %v457_v20  ;;  %v466_v30 = vsel %vm465_vm5, %v463_v19, %v464_v21  ;;  %v1078_v19 = vld [vmem:[%s1832_s5] ss:$0 sm:$0xff] }
 0x114   : > { %v461_v26 = vmul.f32 %v1718_v16, %v460_v24  ;;  %1116 = vmatpush3.bf16.msra.mxu0 %v577_v18  ;;  %1117 = vmatprep.mubr.msk.bf16.mxu0 %vm1467_vm1, %v1466_v5  ;;  %v469_v28 = vmul.f32 %v1722_v23, %v467_v25 }
 0x115   : > { %1129 = vmatprep.subr.bf16.mxu0 %v1466_v5 }
 0x116   : > { %v470_v29 = vpack.c.bf16 %v459_v27, %v461_v26  ;;  %v570_v31 = vpack.c.bf16 %v469_v28, %v466_v30 }
 0x118   : > { %1112 = vmatmul.mubr.msk.bf16.vlgmr.msra.gmra.mxu1 %vm475_vm6, %v470_v29 }
 0x119   : > { %1125 = vmatprep.mubr.msk.bf16.mxu1 %vm1467_vm1, %v1466_v5  ;;  %1122 = vmatpush3.bf16.msra.mxu1 %v1239_v32 }
 0x11a   : > { %1123 = vmatprep.subr.bf16.mxu1 %v1466_v5 }
 0x11b   : > { %1118 = vmatmul.mubr.msk.bf16.vlgmr.msra.gmra.mxu0 %vm475_vm6, %v570_v31 }
 0x11c   : > { %1133 = vmatprep.mubr.msk.bf16.mxu0 %vm1467_vm1, %v1466_v5  ;;  %1130 = vmatpush3.bf16.msra.mxu0 %v1241_v34 }
 0x11d   : > { %1124 = vmatpush3.bf16.msra.mxu1 %v1240_v33  ;;  %1131 = vmatprep.subr.bf16.mxu0 %v1466_v5 }
 0x11e   : > { %1137 = vmatprep.subr.bf16.mxu1 %v1466_v5 }
 0x120   : > { %1132 = vmatpush3.bf16.msra.mxu0 %v1243_v35 }
 0x121   : > { %1145 = vmatprep.subr.bf16.mxu0 %v1466_v5 }
 0x1d3   : > { %v516_v36 = vpop.f32.mrf.mxu0 }
 0x1d5   : > { %v1107_v37 = vpop.f32.mrf.mxu0 }
 0x1d7   : > { %v519_v38 = vpop.f32.mrf.mxu0 }
 0x1d8   : > { %v563_v39 = vpop.f32.mrf.mxu1 }
 0x1d9   : > { %v564_v40 = vadd.f32 %v563_v39, %v516_v36  ;;  %v1108_v41 = vpop.f32.mrf.mxu0 }
 0x1da   : > { %v1113_v42 = vpop.f32.mrf.mxu1 }
 0x1db   : > { %v613_v43 = vpop.f32.mrf.mxu0  ;;  %v860_v42 = vld [vmem:[%s1834_s7] sm:$0x1] }
 0x1dc   : > { %v620_v45 = vadd.f32 %v613_v43, %v564_v40  ;;  %v566_v46 = vpop.f32.mrf.mxu1 }
 0x1dd   : > { %v567_v47 = vadd.f32 %v566_v46, %v519_v38  ;;  %v1119_v48 = vpop.f32.mrf.mxu0 }
 0x1de   : > { %v629_v49 = vadd.f32 %v1068_v44, %v620_v45  ;;  %v1114_v50 = vpop.f32.mrf.mxu1 }
 0x1df   : > { %v616_v51 = vpop.f32.mrf.mxu0 }
 0x1e0   : > { %v621_v52 = vadd.f32 %v616_v51, %v567_v47  ;;  %v631_v53 = vmax.f32 %v629_v49, 0.0 }
 0x1e1   : > { %v1120_v54 = vpop.f32.mrf.mxu0 }
 0x1e2   : > { %v630_v55 = vadd.f32 %v1068_v44, %v621_v52  ;;  %v633_v57 = vrot.slane %v631_v53, 7  ;;  %v639_v59 = vrot.slane %v631_v53, 1 }
 0x1e4   : > { %v632_v56 = vmax.f32 %v630_v55, 0.0 }
 0x1e6   : > { %v634_v60 = vrot.slane %v632_v56, 7  ;;  %v640_v61 = vrot.slane %v632_v56, 1  ;;  %v650_v62 = vpack.c.bf16 %v632_v56, %v631_v53 }
 0x1e8   : > { %v636_v63 = vsel %vm458_vm4, %v634_v60, %v633_v57  ;;  %v642_v0 = vsel %vm465_vm5, %v640_v61, %v639_v59  ;;  %1126 = vmatmul.mubr.msk.bf16.vlgmr.msra.gmra.mxu1 %vm668_vm7, %v650_v62  ;;  %v635_v3 = vsel %vm458_vm4, %v633_v57, %v634_v60  ;;  %v641_v7 = vsel %vm465_vm5, %v639_v59, %v640_v61 }
 0x1e9   : > { %v637_v1 = vmul.f32 %v1718_v16, %v636_v63  ;;  %1138 = vmatpush3.bf16.msra.mxu1 %v1242_v58  ;;  %1141 = vmatprep.mubr.msk.bf16.mxu1 %vm1467_vm1, %v1466_v5  ;;  %v644_v4 = vmul.f32 %v1722_v23, %v642_v0 }
 0x1ea   : > { %1139 = vmatprep.subr.bf16.mxu1 %v1466_v5 }
 0x1eb   : > { %v645_v6 = vpack.c.bf16 %v635_v3, %v637_v1  ;;  %v769_v8 = vpack.c.bf16 %v644_v4, %v641_v7 }
 0x1ed   : > { %1140 = vmatpush3.bf16.msra.mxu1 %v1244_v2  ;;  %1134 = vmatmul.mubr.msk.bf16.vlgmr.msra.gmra.mxu0 %vm668_vm7, %v645_v6 }
 0x1ee   : > { %1149 = vmatprep.mubr.msk.bf16.mxu0 %vm1467_vm1, %v1466_v5  ;;  %1146 = vmatpush3.bf16.msra.mxu0 %v1245_v9 }
 0x1ef   : > { %1147 = vmatprep.subr.bf16.mxu0 %v1466_v5 }
 0x1f0   : > { %1142 = vmatmul.mubr.msk.bf16.vlgmr.msra.gmra.mxu1 %vm668_vm7, %v769_v8 }
 0x1f2   : > { %1148 = vmatpush3.bf16.msra.mxu0 %v1246_v10 }
 0x2a8   : > { %v706_v12 = vpop.f32.mrf.mxu1 }
 0x2aa   : > { %v1127_v13 = vpop.f32.mrf.mxu1 }
 0x2ac   : > { %v709_v14 = vpop.f32.mrf.mxu1 }
 0x2ad   : > { %v762_v11 = vpop.f32.mrf.mxu0 }
 0x2ae   : > { %v763_v15 = vadd.f32 %v762_v11, %v706_v12  ;;  %v1128_v16 = vpop.f32.mrf.mxu1 }
 0x2af   : > { %v1135_v17 = vpop.f32.mrf.mxu0 }
 0x2b0   : > { %v824_v18 = vpop.f32.mrf.mxu1 }
 0x2b1   : > { %v831_v20 = vadd.f32 %v824_v18, %v763_v15  ;;  %v765_v21 = vpop.f32.mrf.mxu0 }
 0x2b2   : > { %v766_v22 = vadd.f32 %v765_v21, %v709_v14  ;;  %v1143_v23 = vpop.f32.mrf.mxu1 }
 0x2b3   : > { %v840_v24 = vadd.f32 %v1078_v19, %v831_v20  ;;  %v1136_v5 = vpop.f32.mrf.mxu0 }
 0x2b4   : > { %v827_v25 = vpop.f32.mrf.mxu1 }
 0x2b5   : > { %v832_v26 = vadd.f32 %v827_v25, %v766_v22  ;;  %v842_v28 = vmax.f32 %v840_v24, 0.0 }
 0x2b6   : > { %v1144_v27 = vpop.f32.mrf.mxu1 }
 0x2b7   : > { %v841_v29 = vadd.f32 %v1078_v19, %v832_v26  ;;  %v844_v31 = vsel %vm668_vm7, %v842_v28, 0.0 }
 0x2b9   : > { %v843_v30 = vmax.f32 %v841_v29, 0.0 }
 0x2bb   : > { %v845_v32 = vsel %vm668_vm7, %v843_v30, 0.0 }
 0x2bc   : > { %v846_v33 = vadd.f32 %v845_v32, %v844_v31 }
 0x2be   : > { %v847_v34 = vrot.slane %v846_v33, 4 }
 0x2c0   : > { %v848_v35 = vadd.f32 %v847_v34, %v846_v33 }
 0x2c2   : > { %v849_v36 = vrot.slane %v848_v35, 2 }
 0x2c4   : > { %v850_v37 = vadd.f32 %v849_v36, %v848_v35 }
 0x2c6   : > { %v851_v38 = vrot.slane %v850_v37, 1 }
 0x2c8   : > { %v852_v39 = vadd.f32 %v851_v38, %v850_v37 }
 0x2ca   : > { %v854_v40 = vmul.f32 0.0625, %v852_v39 }
 0x2cc   : > { %v855_v41 = vpack.c.bf16 %v854_v40, %v854_v40 }
 0x2ce   : > { %1150 = vmatmul.mubr.msk.bf16.vlgmr.msra.gmra.mxu0 %vm668_vm7, %v855_v41 }
 0x38e   : > { %v910_v43 = vpop.f32.mrf.mxu0 }
 0x38f   : > { %v911_v44 = vadd.f32 %v910_v43, %v860_v42 }
 0x390   : > { %v1151_v45 = vpop.f32.mrf.mxu0 }
 0x391   : > { %916 = vst [vmem:[%s399_s10] sm:$0x1] %v911_v44 }
 0x392   : > { %v913_v46 = vpop.f32.mrf.mxu0 }
 0x393   : > { %1394 = shalt.err (!%p1391_p10)
}
 0x394   : > { %s1395_s11 = scalar_lea.hbm %s1784_s14, 16  ;;  %s1399_s17 = scalar_lea.hbm %s1835_s8, 32 }
 0x395   : > { %p1396_p13 = scmp.ne.s32.totalorder %s1784_s14, %s1395_s11  ;;  %p1400_p2 = scmp.lt.s32.totalorder %s1784_s14, %s1835_s8 }
 0x396   : > { %p1401_p4 = scmp.lt.s32.totalorder %s1399_s17, %s1395_s11 }
 0x397   : > { %p1397_p1 = pnand %p1396_p13, %p1862_p0 }
 0x398   : > { %p1402_p6 = por %p1401_p4, %p1400_p2 }
 0x399   : > { %p1398_p11 = pneg %p1397_p1 }
 0x39b   : > { %p1403_p12 = pnand %p1402_p6, %p1398_p11 }
 0x39d   : > { %1406 = shalt.err (!%p1403_p12)
}
 0x39e   : > { %1169 = dma.vmem_to_hbm [thread:$0]  (%p1862_p0), %s1786_s6, 16, %s1784_s14, %s918_s19   ;;  %v1152_v47 = vpop.f32.mrf.mxu0 }
 0x39f PF: > { %s942_s2 = sand.u32 1, %s1445_s27   ;;  %p1863_p5 = scmp.ne.s32.totalorder %s1845_s12, 0 }
 0x3a0   : > { %p1864_p3 = scmp.ge.s32.totalorder %s1457_s30, 2  ;;  %s943_s23 = scalar_lea.sflag [#allocation4], %s942_s2 }
 0x3a2   : > { %p1189_p7 = pnand %p1864_p3, %p1863_p5 }
 0x3a4   : > { %p1190_p9 = pneg %p1189_p7 }
 0x3a6   : > { %1440 = dma.done.wait (%p1190_p9), %s943_s23, 16  }
 0x3a7   : > { %1442 = vsyncadd (%p1190_p9), %s943_s23, 4294967280  ;;  %p25_p8 = scmp.ge.s32.totalorder %s1594_s18, 4   ;;  %s1865_s27 = smov %s1449_s28 }
 0x3a8   : > { %s1866_s28 = smov %s1453_s29  ;;  %s1867_s29 = smov %s1604_s24 }
 0x3a9   : > { %s1868_s30 = smov %s1594_s18  ;;  %27 = sbr.rel (!%p25_p8) target bundleno = 13 (0xd), region = 126 }
 0x3ae   :  { %947 = vsyncpa [#allocation3], 1 }
 0x3af   :  { %949 = vsyncpa [#allocation3 + $0x1], 1 }
 0x3b0   :  { %950 = vsyncpa [#allocation6], 1 }
 0x3b1   :  { %952 = vsyncpa [#allocation6 + $0x1], 1 }
 0x3b2   :  { %953 = vsyncpa [#allocation9], 1 }
 0x3b3   :  { %954 = vsyncpa [#allocation4], 1 }
 0x3b4   :  { %956 = vsyncpa [#allocation4 + $0x1], 1 }

</bundles_post_ra>
